<compile_context>
chip_gen: v5e
topology: v5e:2x2
jax: 0.10.0
libtpu: 0.0.40
codegen_flags: <defaults>
</compile_context>

<pallas_src>
import jax
import jax.numpy as jnp
import numpy as np
from jax.experimental import pallas as pl
from jax.experimental.pallas import tpu as pltpu


# ---------------------------------------------------------------------------
# Pallas kernel:  (Cout, Cin) @ (Cin, TP)  ->  (Cout, TP)   per grid step
# ---------------------------------------------------------------------------
def _conv1x1_kernel(w_ref, x_ref, o_ref):
    # w_ref: (Cout, Cin)  full weight, tiny, resident in VMEM every step
    # x_ref: (Cin, TP)    pixel-column tile of one batch image (native NCHW slab)
    # o_ref: (Cout, TP)   lane-dense output tile
    o_ref[...] = jnp.dot(
        w_ref[...], x_ref[...], preferred_element_type=jnp.float32
    ).astype(o_ref.dtype)


def _choose_pixel_tile(P, max_tp):
    """Pick the pixel-column tile size.

    A whole-image block (tp == P) is always legal (block equals full array
    extent). For large images we tile with a multiple of 128 lanes that
    divides P exactly; otherwise fall back to the whole-image block.
    """
    if P <= max_tp:
        return P
    tp = max_tp - (max_tp % 128)
    while tp >= 128:
        if P % tp == 0:
            return tp
        tp -= 128
    return P


def illumination_layer_forward(x_nchw, weight_oihw, *, max_pixel_tile=2048):
    """IlluminationLayer forward (1x1 conv, no bias) via Pallas matmul.

    x_nchw:      (N, Cin, H, W)    float32
    weight_oihw: (Cout, Cin, 1, 1) float32 (PyTorch Conv2d weight layout)
    returns:     (N, Cout, H, W)   float32
    """
    N, Cin, H, W = x_nchw.shape
    Cout = weight_oihw.shape[0]
    P = H * W

    # Free views: no transposes, no extra HBM traffic.
    x_3d = x_nchw.reshape(N, Cin, P)        # (N, Cin, H*W)
    w_2d = weight_oihw.reshape(Cout, Cin)   # (Cout, Cin)

    tp = _choose_pixel_tile(P, max_pixel_tile)
    grid = (N, P // tp)   # N >= 2 keeps both v7x TensorCores busy

    out_3d = pl.pallas_call(
        _conv1x1_kernel,
        out_shape=jax.ShapeDtypeStruct((N, Cout, P), x_nchw.dtype),
        grid_spec=pltpu.PrefetchScalarGridSpec(
            num_scalar_prefetch=0,
            grid=grid,
            in_specs=[
                # Full weight every step (~11 KB; block index constant).
                pl.BlockSpec((Cout, Cin), lambda n, p: (0, 0)),
                # One (Cin, tp) slab of image n; leading batch dim squeezed.
                pl.BlockSpec((None, Cin, tp), lambda n, p: (n, 0, p)),
            ],
            out_specs=pl.BlockSpec((None, Cout, tp), lambda n, p: (n, 0, p)),
        ),
        compiler_params=pltpu.CompilerParams(
            dimension_semantics=("parallel", "parallel"),
        ),
    )(w_2d, x_3d)

    # Free view back to NCHW.
    return out_3d.reshape(N, Cout, H, W)


# ---------------------------------------------------------------------------
# Deterministic parameter construction (mirrors IlluminationLayer.__init__
# with init_strategy='center': weight[0, i] = 1 if i % 225 == 0 else 0).
# Remaining output channels keep Conv2d-style uniform init values.
# ---------------------------------------------------------------------------
# TODO(synk): the 'off_axis'/'dpc'/'brightfield' init strategies depend on an
# external `from_spiral` helper; only the 'center' strategy is replicated here.
def make_illumination_weights(k_depth, num_channels, key):
    bound = 1.0 / np.sqrt(k_depth)  # PyTorch Conv2d default init bound
    w = jax.random.uniform(
        key, (num_channels, k_depth, 1, 1), minval=-bound, maxval=bound,
        dtype=jnp.float32,
    )
    center = (jnp.arange(k_depth) % 225 == 0).astype(jnp.float32)
    w = w.at[0, :, 0, 0].set(center)
    return w


if __name__ == "__main__":
    key = jax.random.PRNGKey(0)
    k_x, k_w = jax.random.split(key)

    # Module-implied shapes: k_depth = 3 * 225 = 675 input channels.
    N, k_depth, num_channels, H, W = 2, 675, 4, 16, 16

    x = jax.random.normal(k_x, (N, k_depth, H, W), dtype=jnp.float32)
    weight = make_illumination_weights(k_depth, num_channels, k_w)

    out = illumination_layer_forward(x, weight)
    out = jax.block_until_ready(out)

    # Reference check (pure JAX 1x1-conv semantics).
    ref = jnp.einsum("nihw,oi->nohw", x, weight[:, :, 0, 0])
    np.testing.assert_allclose(np.asarray(out), np.asarray(ref), rtol=1e-5, atol=1e-5)

    assert out.shape == (N, num_channels, H, W)
    print("KERNEL_OK")
</pallas_src>

<mosaic_0001>
module attributes {stable_mosaic.version = 11 : i64} {
  func.func @_conv1x1_kernel(%arg0: i32, %arg1: i32, %arg2: memref<4x675xf32, #tpu.memory_space<vmem>>, %arg3: memref<1x675x256xf32, #tpu.memory_space<vmem>>, %arg4: memref<1x4x256xf32, #tpu.memory_space<vmem>>) attributes {dimension_semantics = [#tpu.dimension_semantics<parallel>, #tpu.dimension_semantics<parallel>], iteration_bounds = array<i64: 2, 1>, scalar_prefetch = 0 : i64, scratch_operands = 0 : i64, tpu.core_type = #tpu.core_type<tc>, window_params = [{pipeline_mode = #tpu.pipeline_mode<synchronous>, transform_indices = @transform_0, window_bounds = array<i64: 4, 675>}, {transform_indices = @transform_1, window_bounds = array<i64: 1, 675, 256>}, {transform_indices = @transform_2, window_bounds = array<i64: 1, 4, 256>}]} {
    %c0 = arith.constant 0 : index
    %c0_0 = arith.constant 0 : index
    %0 = vector.load %arg2[%c0, %c0_0] : memref<4x675xf32, #tpu.memory_space<vmem>>, vector<4x675xf32>
    %c0_1 = arith.constant 0 : index
    %c0_2 = arith.constant 0 : index
    %c0_3 = arith.constant 0 : index
    %1 = vector.load %arg3[%c0_1, %c0_2, %c0_3] : memref<1x675x256xf32, #tpu.memory_space<vmem>>, vector<1x675x256xf32>
    %2 = vector.shape_cast %1 : vector<1x675x256xf32> to vector<675x256xf32>
    %cst = arith.constant dense<0.000000e+00> : vector<4x256xf32>
    %3 = tpu.matmul %0, %2, %cst {dimension_numbers = #tpu.dot_dimension_numbers<[1], [0], [0], [1], [0, 0, 1, 1], [], []>} : vector<4x675xf32>, vector<675x256xf32>, vector<4x256xf32> -> vector<4x256xf32>
    %c0_4 = arith.constant 0 : index
    %c0_5 = arith.constant 0 : index
    %c0_6 = arith.constant 0 : index
    %4 = vector.load %arg4[%c0_4, %c0_5, %c0_6] : memref<1x4x256xf32, #tpu.memory_space<vmem>>, vector<1x4x256xf32>
    %5 = vector.shape_cast %4 : vector<1x4x256xf32> to vector<4x256xf32>
    %6 = vector.shape_cast %3 : vector<4x256xf32> to vector<1x4x256xf32>
    tpu.vector_store %arg4[%c0_4, %c0_5, %c0_6], %6 {strides = array<i32>} : memref<1x4x256xf32, #tpu.memory_space<vmem>>, vector<1x4x256xf32>,
    return
  }
  func.func @transform_0(%arg0: i32, %arg1: i32) -> (i32, i32) {
    %c0_i32 = arith.constant 0 : i32
    %c0_i32_0 = arith.constant 0 : i32
    %c0_i32_1 = arith.constant 0 : i32
    return %c0_i32, %c0_i32_0 : i32, i32
  }
  func.func @transform_1(%arg0: i32, %arg1: i32) -> (i32, i32, i32) {
    %c0_i32 = arith.constant 0 : i32
    %c0_i32_0 = arith.constant 0 : i32
    return %arg0, %c0_i32, %arg1 : i32, i32, i32
  }
  func.func @transform_2(%arg0: i32, %arg1: i32) -> (i32, i32, i32) {
    %c0_i32 = arith.constant 0 : i32
    %c0_i32_0 = arith.constant 0 : i32
    return %arg0, %c0_i32, %arg1 : i32, i32, i32
  }
}

</mosaic_0001>

<bundles_post_ra>
// kernel: tpu_custom_call.1
= control target key start
LH: loop header
LB: loop body
LE: loop exit
PB: predicated region body
PF: predicated region fallthrough
CT: control target
= control target key end

     0   :  { %7 = vsyncpa [#allocation3], 0  ;;  %s1191_s0 = inlined_call_operand.vmem [shape: f32[4,675], index: 0, kind: input, shape index: {}]   ;;  %s1192_s1 = inlined_call_operand.vmem [shape: f32[2,675,256], index: 1, kind: input, shape index: {}]   ;;  %s1193_s2 = inlined_call_operand.hbm [shape: f32[2,4,256], index: 2, kind: output, shape index: {}]  }
   0x1   :  { %9 = vsyncpa [#allocation3 + $0x1], 0  ;;  %s885_s9 = smov 0   ;;  %s887_s10 = smov 0  }
   0x2   :  { %s889_s11 = smov 0   ;;  %s891_s12 = smov 0  }
   0x3   :  { %s893_s13 = smov 0   ;;  %s895_s14 = smov 0  }
   0x4 LB: > { %s717_s15 = sadd.s32 4294967295, %s868_s14   ;;  %s718_s16 = sadd.s32 4294967294, %s868_s14   ;;  %s868_s14 = sphi %s895_s14, %s15_s14   ;;  %s864_s13 = sphi %s893_s13, %s1200_s13   ;;  %s860_s12 = sphi %s891_s12, %s1199_s12   ;;  %s856_s11 = sphi %s889_s11, %s1198_s11   ;;  %s852_s10 = sphi %s887_s10, %s1197_s10   ;;  %s848_s9 = sphi %s885_s9, %s1196_s9  }
   0x5   : > { %s27_s17 = sadd.s32 1, %s864_s13  ;;  %s85_s18 = sadd.s32 1, %s856_s11 }
   0x6   : > { %p29_p0 = scmp.ge.s32.totalorder %s27_s17, 2  ;;  %p95_p1 = scmp.ne.s32.totalorder %s856_s11, %s852_s10 }
   0x7   : > { %p96_p2 = scmp.eq.s32.totalorder %s717_s15, 1  ;;  %p101_p3 = scmp.ne.s32.totalorder %s852_s10, %s848_s9 }
   0x8   : > { %s1202_s17 = smov (%p29_p0, %s27_s17), 0  ;;  %p102_p5 = scmp.eq.s32.totalorder %s718_s16, 1 }
   0x9   : > { %p925_p4 = por %p96_p2, %p95_p1  ;;  %s80_s20 = ssub.s32 %s864_s13, %s1202_s17 }
   0xa   : > { %p721_p6 = scmp.ge.s32.totalorder %s868_s14, 1  ;;  %p83_p7 = scmp.eq.s32.totalorder %s80_s20, 0 }
   0xb   : > { %p932_p8 = por %p102_p5, %p101_p3  ;;  %p136_p9 = scmp.lt.s32.totalorder %s868_s14, 3 }
   0xc   : > { %s938_s22 = scalar_select %p83_p7, %s856_s11, %s85_s18  }
   0xd   : > { %p137_p10 = pnand %p721_p6, %p136_p9 }
   0xe   : > { %p163_p11 = scmp.lt.s32.totalorder (!%p137_p10), %s860_s12, 1  ;;  %s159_s6 = sand.u32 (!%p137_p10), 1, %s852_s10  }
   0xf   : > { %140 = sbr.rel (%p137_p10) target bundleno = 263 (0x107), region = 28  ;;  %s722_s7 = sshll.u32 (!%p137_p10), %s159_s6, 3 }
  0x10   : > { %s733_s8 = sshll.u32 (!%p137_p10), %s860_s12, 3  ;;  %s161_s20 = scalar_lea.vmem (!%p137_p10), [#allocation2], %s722_s7 }
  0x11   : > { %s636_s18 = scalar_lea.hbm (!%p137_p10), %s1193_s2, %s733_s8  ;;  %s810_s29 = scalar_lea.hbm (!%p137_p10), %s1193_s2, 16 }
  0x14   : > { %s164_s23 = scalar_select %p163_p11, %s860_s12, 1  ;;  %vm368_vm0 = vcmask 1042432   ;;  %vm365_vm1 = vcmask 285696   ;;  %vm618_vm2 = vcmask 1043456  }
  0x15   : > { %s623_s12 = scalar_lea.sflag [#allocation3], %s159_s6 }
  0x16   : > { %s734_s24 = smul.u32 1360, %s164_s23  ;;  %s638_s23 = sshll.u32 %s161_s20, 4  ;;  %s639_s23 = int_to_ptr.vmem [resolvable:$true] %s638_s23 }
  0x18   : > { %s945_s27 = scalar_lea.vmem %s1192_s1, %s734_s24  ;;  %s640_s24 = sshll.u32 %s636_s18, 4  ;;  %s641_s24 = int_to_ptr.hbm [resolvable:$true] %s640_s24 }
  0x19   : > { %v270_v0 = vld [vmem:[%s945_s27 + $0x2f0] sm:$0xff]  ;;  %v268_v2 = vld [vmem:[%s945_s27 + $0x2e0] sm:$0xff]  ;;  %v207_v55 = vld [vmem:[%s945_s27 + $0xf8] sm:$0xff]  ;;  %s804_s25 = sshra.s32 %s641_s24, 4  ;;  %s805_s25 = int_to_ptr.hbm [resolvable:$true] %s804_s25 }
  0x1a   : > { %v206_v1 = vld [vmem:[%s945_s27 + $0xf0] sm:$0xff]  ;;  %415 = vmatpush.msra.mxu2 %v270_v0  ;;  %v204_v3 = vld [vmem:[%s945_s27 + $0xe0] sm:$0xff]  ;;  %v205_v59 = vld [vmem:[%s945_s27 + $0xe8] sm:$0xff]  ;;  %s806_s26 = scalar_lea.hbm %s805_s25, 8  ;;  %p811_p1 = scmp.lt.s32.totalorder %s805_s25, %s1193_s2 }
  0x1b   : > { %375 = vmatpush.msra.mxu0 %v206_v1  ;;  %v266_v4 = vld [vmem:[%s945_s27 + $0x2d0] sm:$0xff]  ;;  %v264_v6 = vld [vmem:[%s945_s27 + $0x2c0] sm:$0xff]  ;;  %v203_v63 = vld [vmem:[%s945_s27 + $0xd8] sm:$0xff]  ;;  %p807_p12 = scmp.ne.s32.totalorder %s805_s25, %s806_s26  ;;  %p812_p2 = scmp.lt.s32.totalorder %s810_s29, %s806_s26 }
  0x1c   : > { %v202_v5 = vld [vmem:[%s945_s27 + $0xd0] sm:$0xff]  ;;  %416 = vmatpush.msra.mxu2 %v268_v2  ;;  %v200_v7 = vld [vmem:[%s945_s27 + $0xc0] sm:$0xff]  ;;  %v174_v1 = vld [vmem:[%s1191_s0 + $0x8] sm:$0xff] }
  0x1d   : > { %376 = vmatpush.msra.mxu0 %v204_v3  ;;  %v262_v8 = vld [vmem:[%s945_s27 + $0x2b0] sm:$0xff]  ;;  %v260_v10 = vld [vmem:[%s945_s27 + $0x2a0] sm:$0xff]  ;;  %351 = vst [vmem:[#allocation1 + $0x10] ss:$2 sm:$0xff] %v174_v1  ;;  %v299_v1 = vld [vmem:[%s945_s27 + $0x3d8] sm:$0xff]  ;;  %p808_p13 = pnand %p807_p12, %p925_p4  ;;  %p813_p3 = por %p812_p2, %p811_p1 }
  0x1e   : > { %417 = vmatpush.msra.mxu2 %v266_v4  ;;  %v198_v9 = vld [vmem:[%s945_s27 + $0xb0] sm:$0xff]  ;;  %v196_v12 = vld [vmem:[%s945_s27 + $0xa0] sm:$0xff]  ;;  %v201_v4 = vld [vmem:[%s945_s27 + $0xc8] sm:$0xff] }
  0x1f   : > { %377 = vmatpush.msra.mxu0 %v202_v5  ;;  %v238_v11 = vld [vmem:[%s945_s27 + $0x1f0] sm:$0xff]  ;;  %v236_v14 = vld [vmem:[%s945_s27 + $0x1e0] sm:$0xff]  ;;  %p809_p0 = pneg %p808_p13 }
  0x20   : > { %418 = vmatpush.msra.mxu2 %v264_v6  ;;  %395 = vmatpush.msra.mxu1 %v238_v11  ;;  %v302_v13 = vld [vmem:[%s945_s27 + $0x3f0] sm:$0xff]  ;;  %v300_v15 = vld [vmem:[%s945_s27 + $0x3e0] sm:$0xff] }
  0x21   : > { %378 = vmatpush.msra.mxu0 %v200_v7  ;;  %v258_v16 = vld [vmem:[%s945_s27 + $0x290] sm:$0xff]  ;;  %435 = vmatpush.msra.mxu3 %v302_v13  ;;  %v232_v20 = vld [vmem:[%s945_s27 + $0x1c0] sm:$0xff]  ;;  %v197_v13 = vld [vmem:[%s945_s27 + $0xa8] sm:$0xff]  ;;  %p814_p5 = pnand %p813_p3, %p809_p0 }
  0x22   : > { %419 = vmatpush.msra.mxu2 %v262_v8  ;;  %v194_v17 = vld [vmem:[%s945_s27 + $0x90] sm:$0xff]  ;;  %396 = vmatpush.msra.mxu1 %v236_v14  ;;  %v256_v21 = vld [vmem:[%s945_s27 + $0x280] sm:$0xff] }
  0x23   : > { %379 = vmatpush.msra.mxu0 %v198_v9  ;;  %v234_v18 = vld [vmem:[%s945_s27 + $0x1d0] sm:$0xff]  ;;  %v192_v22 = vld [vmem:[%s945_s27 + $0x80] sm:$0xff]  ;;  %436 = vmatpush.msra.mxu3 %v300_v15  ;;  %v199_v9 = vld [vmem:[%s945_s27 + $0xb8] sm:$0xff] }
  0x24   : > { %420 = vmatpush.msra.mxu2 %v260_v10  ;;  %v298_v19 = vld [vmem:[%s945_s27 + $0x3d0] sm:$0xff]  ;;  %397 = vmatpush.msra.mxu1 %v234_v18  ;;  %v296_v23 = vld [vmem:[%s945_s27 + $0x3c0] sm:$0xff]  ;;  %v239_v15 = vld [vmem:[%s945_s27 + $0x1f8] sm:$0xff] }
  0x25   : > { %380 = vmatpush.msra.mxu0 %v196_v12  ;;  %v230_v24 = vld [vmem:[%s945_s27 + $0x1b0] sm:$0xff]  ;;  %437 = vmatpush.msra.mxu3 %v298_v19  ;;  %v228_v28 = vld [vmem:[%s945_s27 + $0x1a0] sm:$0xff]  ;;  %v195_v18 = vld [vmem:[%s945_s27 + $0x98] sm:$0xff] }
  0x26   : > { %421 = vmatpush.msra.mxu2 %v258_v16  ;;  %v254_v25 = vld [vmem:[%s945_s27 + $0x270] sm:$0xff]  ;;  %398 = vmatpush.msra.mxu1 %v232_v20  ;;  %v252_v29 = vld [vmem:[%s945_s27 + $0x260] sm:$0xff]  ;;  %v237_v20 = vld [vmem:[%s945_s27 + $0x1e8] sm:$0xff] }
  0x27   : > { %381 = vmatpush.msra.mxu0 %v194_v17  ;;  %v190_v26 = vld [vmem:[%s945_s27 + $0x70] sm:$0xff]  ;;  %v188_v30 = vld [vmem:[%s945_s27 + $0x60] sm:$0xff]  ;;  %438 = vmatpush.msra.mxu3 %v296_v23 }
  0x28   : > { %422 = vmatpush.msra.mxu2 %v256_v21  ;;  %v294_v27 = vld [vmem:[%s945_s27 + $0x3b0] sm:$0xff]  ;;  %399 = vmatpush.msra.mxu1 %v230_v24  ;;  %v292_v31 = vld [vmem:[%s945_s27 + $0x3a0] sm:$0xff]  ;;  %v235_v24 = vld [vmem:[%s945_s27 + $0x1d8] sm:$0xff] }
  0x29   : > { %382 = vmatpush.msra.mxu0 %v192_v22  ;;  %v226_v32 = vld [vmem:[%s945_s27 + $0x190] sm:$0xff]  ;;  %439 = vmatpush.msra.mxu3 %v294_v27  ;;  %v224_v36 = vld [vmem:[%s945_s27 + $0x180] sm:$0xff]  ;;  %v193_v22 = vld [vmem:[%s945_s27 + $0x88] sm:$0xff] }
  0x2a   : > { %423 = vmatpush.msra.mxu2 %v254_v25  ;;  %v250_v33 = vld [vmem:[%s945_s27 + $0x250] sm:$0xff]  ;;  %400 = vmatpush.msra.mxu1 %v228_v28  ;;  %v248_v37 = vld [vmem:[%s945_s27 + $0x240] sm:$0xff] }
  0x2b   : > { %383 = vmatpush.msra.mxu0 %v190_v26  ;;  %v186_v34 = vld [vmem:[%s945_s27 + $0x50] sm:$0xff]  ;;  %v184_v38 = vld [vmem:[%s945_s27 + $0x40] sm:$0xff]  ;;  %440 = vmatpush.msra.mxu3 %v292_v31  ;;  %v191_v26 = vld [vmem:[%s945_s27 + $0x78] sm:$0xff] }
  0x2c   : > { %424 = vmatpush.msra.mxu2 %v252_v29  ;;  %v290_v35 = vld [vmem:[%s945_s27 + $0x390] sm:$0xff]  ;;  %401 = vmatpush.msra.mxu1 %v226_v32  ;;  %v288_v39 = vld [vmem:[%s945_s27 + $0x380] sm:$0xff]  ;;  %v233_v29 = vld [vmem:[%s945_s27 + $0x1c8] sm:$0xff] }
  0x2d   : > { %384 = vmatpush.msra.mxu0 %v188_v30  ;;  %v222_v40 = vld [vmem:[%s945_s27 + $0x170] sm:$0xff]  ;;  %441 = vmatpush.msra.mxu3 %v290_v35  ;;  %v220_v44 = vld [vmem:[%s945_s27 + $0x160] sm:$0xff]  ;;  %v189_v30 = vld [vmem:[%s945_s27 + $0x68] sm:$0xff] }
  0x2e   : > { %425 = vmatpush.msra.mxu2 %v250_v33  ;;  %v246_v41 = vld [vmem:[%s945_s27 + $0x230] sm:$0xff]  ;;  %402 = vmatpush.msra.mxu1 %v224_v36  ;;  %v244_v45 = vld [vmem:[%s945_s27 + $0x220] sm:$0xff] }
  0x2f   : > { %385 = vmatpush.msra.mxu0 %v186_v34  ;;  %v182_v42 = vld [vmem:[%s945_s27 + $0x30] sm:$0xff]  ;;  %v180_v46 = vld [vmem:[%s945_s27 + $0x20] sm:$0xff]  ;;  %442 = vmatpush.msra.mxu3 %v288_v39  ;;  %v187_v34 = vld [vmem:[%s945_s27 + $0x58] sm:$0xff] }
  0x30   : > { %426 = vmatpush.msra.mxu2 %v248_v37  ;;  %v286_v43 = vld [vmem:[%s945_s27 + $0x370] sm:$0xff]  ;;  %403 = vmatpush.msra.mxu1 %v222_v40  ;;  %v284_v47 = vld [vmem:[%s945_s27 + $0x360] sm:$0xff]  ;;  %v1059_v37 = vld.sshfl [vmem:[#allocation1 + $0x18] sm:$0xff pattern:$0x75316420] }
  0x31   : > { %386 = vmatpush.msra.mxu0 %v184_v38  ;;  %v218_v48 = vld [vmem:[%s945_s27 + $0x150] sm:$0xff]  ;;  %443 = vmatpush.msra.mxu3 %v286_v43  ;;  %v216_v52 = vld [vmem:[%s945_s27 + $0x140] sm:$0xff]  ;;  %v185_v38 = vld [vmem:[%s945_s27 + $0x48] sm:$0xff] }
  0x32   : > { %427 = vmatpush.msra.mxu2 %v246_v41  ;;  %v242_v49 = vld [vmem:[%s945_s27 + $0x210] sm:$0xff]  ;;  %404 = vmatpush.msra.mxu1 %v220_v44  ;;  %v240_v53 = vld [vmem:[%s945_s27 + $0x200] sm:$0xff]  ;;  %v231_v40 = vld [vmem:[%s945_s27 + $0x1b8] sm:$0xff] }
  0x33   : > { %387 = vmatpush.msra.mxu0 %v182_v42  ;;  %v178_v50 = vld [vmem:[%s945_s27 + $0x10] sm:$0xff]  ;;  %v176_v54 = vld [vmem:[%s945_s27] sm:$0xff]  ;;  %444 = vmatpush.msra.mxu3 %v284_v47  ;;  %v271_v41 = vld [vmem:[%s945_s27 + $0x2f8] sm:$0xff] }
  0x34   : > { %428 = vmatpush.msra.mxu2 %v244_v45  ;;  %v282_v51 = vld [vmem:[%s945_s27 + $0x350] sm:$0xff]  ;;  %405 = vmatpush.msra.mxu1 %v218_v48  ;;  %v280_v57 = vld [vmem:[%s945_s27 + $0x340] sm:$0xff]  ;;  %v183_v42 = vld [vmem:[%s945_s27 + $0x38] sm:$0xff] }
  0x35   : > { %388 = vmatpush.msra.mxu0 %v180_v46  ;;  %v334_v56 = vld [vmem:[%s945_s27 + $0x4f0] sm:$0xff]  ;;  %445 = vmatpush.msra.mxu3 %v282_v51  ;;  %v332_v60 = vld [vmem:[%s945_s27 + $0x4e0] sm:$0xff]  ;;  %v229_v44 = vld [vmem:[%s945_s27 + $0x1a8] sm:$0xff] }
  0x36   : > { %429 = vmatpush.msra.mxu2 %v242_v49  ;;  %406 = vmatpush.msra.mxu1 %v216_v52  ;;  %v214_v58 = vld [vmem:[%s945_s27 + $0x130] sm:$0xff]  ;;  %v212_v62 = vld [vmem:[%s945_s27 + $0x120] sm:$0xff]  ;;  %v269_v45 = vld [vmem:[%s945_s27 + $0x2e8] sm:$0xff] }
  0x37   : > { %389 = vmatpush.msra.mxu0 %v178_v50  ;;  %v278_v61 = vld [vmem:[%s945_s27 + $0x330] sm:$0xff]  ;;  %446 = vmatpush.msra.mxu3 %v280_v57  ;;  %v276_v2 = vld [vmem:[%s945_s27 + $0x320] sm:$0xff]  ;;  %v181_v46 = vld [vmem:[%s945_s27 + $0x28] sm:$0xff] }
  0x38   : > { %430 = vmatpush.msra.mxu2 %v240_v53  ;;  %v330_v0 = vld [vmem:[%s945_s27 + $0x4d0] sm:$0xff]  ;;  %407 = vmatpush.msra.mxu1 %v214_v58  ;;  %v328_v5 = vld [vmem:[%s945_s27 + $0x4c0] sm:$0xff]  ;;  %v227_v48 = vld [vmem:[%s945_s27 + $0x198] sm:$0xff] }
  0x39   : > { %390 = vmatpush.msra.mxu0 %v176_v54  ;;  %v210_v3 = vld [vmem:[%s945_s27 + $0x110] sm:$0xff]  ;;  %447 = vmatpush.msra.mxu3 %v278_v61  ;;  %v173_v6 = vld [vmem:[%s1191_s0] sm:$0xff]  ;;  %v267_v49 = vld [vmem:[%s945_s27 + $0x2d8] sm:$0xff] }
  0x3a   : > { %495 = vmatpush.msrb.mxu2 %v207_v55  ;;  %408 = vmatpush.msra.mxu1 %v212_v62  ;;  %v274_v7 = vld [vmem:[%s945_s27 + $0x310] sm:$0xff]  ;;  %v208_v8 = vld [vmem:[%s945_s27 + $0x100] sm:$0xff]  ;;  %349 = vst [vmem:[#allocation1] ss:$2 sm:$0xff] %v173_v6  ;;  %v179_v50 = vld [vmem:[%s945_s27 + $0x18] sm:$0xff] }
  0x3b   : > { %455 = vmatpush.msrb.mxu0 %v334_v56  ;;  %v326_v10 = vld [vmem:[%s945_s27 + $0x4b0] sm:$0xff]  ;;  %448 = vmatpush.msra.mxu3 %v276_v2  ;;  %v272_v11 = vld [vmem:[%s945_s27 + $0x300] sm:$0xff]  ;;  %v225_v52 = vld [vmem:[%s945_s27 + $0x188] sm:$0xff] }
  0x3c   : > { %496 = vmatpush.msrb.mxu2 %v205_v59  ;;  %409 = vmatpush.msra.mxu1 %v210_v3  ;;  %v344_v12 = vld [vmem:[%s945_s27 + $0x540] sm:$0x7]  ;;  %v342_v16 = vld [vmem:[%s945_s27 + $0x530] sm:$0xff]  ;;  %v265_v53 = vld [vmem:[%s945_s27 + $0x2c8] sm:$0xff] }
  0x3d   : > { %456 = vmatpush.msrb.mxu0 %v332_v60  ;;  %v324_v14 = vld [vmem:[%s945_s27 + $0x4a0] sm:$0xff]  ;;  %449 = vmatpush.msra.mxu3 %v274_v7  ;;  %v175_v17 = vld [vmem:[%s1191_s0 + $0x10] sm:$0xff]  ;;  %v177_v54 = vld [vmem:[%s945_s27 + $0x8] sm:$0xff] }
  0x3e   : > { %497 = vmatpush.msrb.mxu2 %v203_v63  ;;  %410 = vmatpush.msra.mxu1 %v208_v8  ;;  %v322_v19 = vld [vmem:[%s945_s27 + $0x490] sm:$0xff]  ;;  %v340_v21 = vld [vmem:[%s945_s27 + $0x520] sm:$0xff]  ;;  %353 = vst [vmem:[#allocation1 + $0x20] ss:$2 sm:$0xff] %v175_v17  ;;  %v335_v56 = vld [vmem:[%s945_s27 + $0x4f8] sm:$0xff] }
  0x3f   : > { %457 = vmatpush.msrb.mxu0 %v330_v0  ;;  %450 = vmatpush.msra.mxu3 %v272_v11  ;;  %v320_v23 = vld [vmem:[%s945_s27 + $0x480] sm:$0xff]  ;;  %v338_v25 = vld [vmem:[%s945_s27 + $0x510] sm:$0xff]  ;;  %v303_v57 = vld [vmem:[%s945_s27 + $0x3f8] sm:$0xff] }
  0x40   : > { %498 = vmatpush.msrb.mxu2 %v201_v4  ;;  %724 = vmatpush.msk.msrb.mxu1 %vm368_vm0, %v344_v12  ;;  %v318_v27 = vld [vmem:[%s945_s27 + $0x470] sm:$0xff]  ;;  %v316_v31 = vld [vmem:[%s945_s27 + $0x460] sm:$0xff]  ;;  %v223_v59 = vld [vmem:[%s945_s27 + $0x178] sm:$0xff] }
  0x41   : > { %458 = vmatpush.msrb.mxu0 %v328_v5  ;;  %515 = vmatpush.msrb.mxu3 %v239_v15  ;;  %v1046_v28 = vld.sshfl [vmem:[#allocation1 + $0x10] sm:$0xff pattern:$0x75316420]  ;;  %v336_v32 = vld [vmem:[%s945_s27 + $0x500] sm:$0xff]  ;;  %v333_v60 = vld [vmem:[%s945_s27 + $0x4e8] sm:$0xff] }
  0x42   : > { %499 = vmatpush.msrb.mxu2 %v199_v9  ;;  %487 = vmatpush.msrb.mxu1 %v342_v16  ;;  %v1052_v33 = vld.sshfl [vmem:[#allocation1] sm:$0xff pattern:$0x75316420]  ;;  %v314_v35 = vld [vmem:[%s945_s27 + $0x450] sm:$0xff]  ;;  %v301_v61 = vld [vmem:[%s945_s27 + $0x3e8] sm:$0xff] }
  0x43   : > { %459 = vmatpush.msrb.mxu0 %v326_v10  ;;  %516 = vmatpush.msrb.mxu3 %v237_v20  ;;  %v1057_v36 = vld.sshfl [vmem:[#allocation1 + $0x8] sm:$0xff pattern:$0x75316420]  ;;  %v312_v39 = vld [vmem:[%s945_s27 + $0x440] sm:$0xff]  ;;  %v310_v43 = vld [vmem:[%s945_s27 + $0x430] sm:$0xff] }
  0x44   : > { %500 = vmatpush.msrb.mxu2 %v197_v13  ;;  %488 = vmatpush.msrb.mxu1 %v340_v21  ;;  %v308_v47 = vld [vmem:[%s945_s27 + $0x420] sm:$0xff]  ;;  %v306_v51 = vld [vmem:[%s945_s27 + $0x410] sm:$0xff]  ;;  %v263_v62 = vld [vmem:[%s945_s27 + $0x2b8] sm:$0xff] }
  0x45   : > { %460 = vmatpush.msrb.mxu0 %v324_v14  ;;  %517 = vmatpush.msrb.mxu3 %v235_v24  ;;  %v304_v55 = vld [vmem:[%s945_s27 + $0x400] sm:$0xff]  ;;  %v221_v63 = vld [vmem:[%s945_s27 + $0x168] sm:$0xff]  ;;  %v331_v0 = vld [vmem:[%s945_s27 + $0x4d8] sm:$0xff] }
  0x46   : > { %501 = vmatpush.msrb.mxu2 %v195_v18  ;;  %489 = vmatpush.msrb.mxu1 %v338_v25  ;;  %v1084_v58 = vld.sshfl [vmem:[#allocation1 + $0x20] sm:$0xff pattern:$0x75316420]  ;;  %v1094_v2 = vld.sshfl [vmem:[#allocation1 + $0x28] sm:$0xff pattern:$0x75316420] }
  0x47   : > { %461 = vmatpush.msrb.mxu0 %v322_v19  ;;  %431 = vmatmul.f32.vlgmr.msra.gmra.mxu2 %v1046_v28  ;;  %v219_v3 = vld [vmem:[%s945_s27 + $0x158] sm:$0xff]  ;;  %v329_v4 = vld [vmem:[%s945_s27 + $0x4c8] sm:$0xff] }
  0x48   : > { %502 = vmatpush.msrb.mxu2 %v193_v22  ;;  %518 = vmatpush.msrb.mxu3 %v233_v29  ;;  %v297_v5 = vld [vmem:[%s945_s27 + $0x3c8] sm:$0xff]  ;;  %v327_v8 = vld [vmem:[%s945_s27 + $0x4b8] sm:$0xff] }
  0x49   : > { %462 = vmatpush.msrb.mxu0 %v320_v23  ;;  %490 = vmatpush.msrb.mxu1 %v336_v32  ;;  %v261_v6 = vld [vmem:[%s945_s27 + $0x2a8] sm:$0xff]  ;;  %v295_v9 = vld [vmem:[%s945_s27 + $0x3b8] sm:$0xff] }
  0x4a   : > { %503 = vmatpush.msrb.mxu2 %v191_v26  ;;  %391 = vmatmul.f32.vlgmr.msra.gmra.mxu0 %v1052_v33  ;;  %v217_v7 = vld [vmem:[%s945_s27 + $0x148] sm:$0xff]  ;;  %v259_v10 = vld [vmem:[%s945_s27 + $0x298] sm:$0xff] }
  0x4b   : > { %463 = vmatpush.msrb.mxu0 %v318_v27  ;;  %411 = vmatmul.f32.vlgmr.msra.gmra.mxu1 %v1057_v36  ;;  %v215_v11 = vld [vmem:[%s945_s27 + $0x138] sm:$0xff]  ;;  %v325_v12 = vld [vmem:[%s945_s27 + $0x4a8] sm:$0xff] }
  0x4c   : > { %504 = vmatpush.msrb.mxu2 %v189_v30  ;;  %451 = vmatmul.f32.vlgmr.msra.gmra.mxu3 %v1059_v37  ;;  %v293_v13 = vld [vmem:[%s945_s27 + $0x3a8] sm:$0xff]  ;;  %v323_v16 = vld [vmem:[%s945_s27 + $0x498] sm:$0xff] }
  0x4d   : > { %464 = vmatpush.msrb.mxu0 %v316_v31  ;;  %519 = vmatpush.msrb.mxu3 %v231_v40  ;;  %v257_v14 = vld [vmem:[%s945_s27 + $0x288] sm:$0xff]  ;;  %v291_v17 = vld [vmem:[%s945_s27 + $0x398] sm:$0xff] }
  0x4e   : > { %505 = vmatpush.msrb.mxu2 %v187_v34  ;;  %535 = vmatpush.msra.mxu1 %v271_v41  ;;  %v213_v15 = vld [vmem:[%s945_s27 + $0x128] sm:$0xff]  ;;  %v255_v18 = vld [vmem:[%s945_s27 + $0x278] sm:$0xff] }
  0x4f   : > { %465 = vmatpush.msrb.mxu0 %v314_v35  ;;  %520 = vmatpush.msrb.mxu3 %v229_v44  ;;  %v211_v19 = vld [vmem:[%s945_s27 + $0x118] sm:$0xff]  ;;  %v321_v20 = vld [vmem:[%s945_s27 + $0x488] sm:$0xff] }
  0x50   : > { %506 = vmatpush.msrb.mxu2 %v185_v38  ;;  %536 = vmatpush.msra.mxu1 %v269_v45  ;;  %v289_v21 = vld [vmem:[%s945_s27 + $0x388] sm:$0xff]  ;;  %v319_v24 = vld [vmem:[%s945_s27 + $0x478] sm:$0xff] }
  0x51   : > { %466 = vmatpush.msrb.mxu0 %v312_v39  ;;  %521 = vmatpush.msrb.mxu3 %v227_v48  ;;  %v253_v22 = vld [vmem:[%s945_s27 + $0x268] sm:$0xff]  ;;  %v287_v25 = vld [vmem:[%s945_s27 + $0x378] sm:$0xff] }
  0x52   : > { %507 = vmatpush.msrb.mxu2 %v183_v42  ;;  %537 = vmatpush.msra.mxu1 %v267_v49  ;;  %v209_v23 = vld [vmem:[%s945_s27 + $0x108] sm:$0xff]  ;;  %v251_v26 = vld [vmem:[%s945_s27 + $0x258] sm:$0xff] }
  0x53   : > { %467 = vmatpush.msrb.mxu0 %v310_v43  ;;  %522 = vmatpush.msrb.mxu3 %v225_v52  ;;  %v317_v27 = vld [vmem:[%s945_s27 + $0x468] sm:$0xff]  ;;  %v315_v31 = vld [vmem:[%s945_s27 + $0x458] sm:$0xff] }
  0x54   : > { %508 = vmatpush.msrb.mxu2 %v181_v46  ;;  %538 = vmatpush.msra.mxu1 %v265_v53  ;;  %v285_v29 = vld [vmem:[%s945_s27 + $0x368] sm:$0xff]  ;;  %v283_v32 = vld [vmem:[%s945_s27 + $0x358] sm:$0xff] }
  0x55   : > { %468 = vmatpush.msrb.mxu0 %v308_v47  ;;  %523 = vmatpush.msrb.mxu3 %v223_v59  ;;  %v249_v30 = vld [vmem:[%s945_s27 + $0x248] sm:$0xff]  ;;  %v247_v34 = vld [vmem:[%s945_s27 + $0x238] sm:$0xff] }
  0x56   : > { %509 = vmatpush.msrb.mxu2 %v179_v50  ;;  %539 = vmatpush.msra.mxu1 %v263_v62  ;;  %v345_v35 = vld [vmem:[%s945_s27 + $0x548] sm:$0x7]  ;;  %v343_v41 = vld [vmem:[%s945_s27 + $0x538] sm:$0xff] }
  0x57   : > { %469 = vmatpush.msrb.mxu0 %v306_v51  ;;  %524 = vmatpush.msrb.mxu3 %v221_v63  ;;  %v313_v38 = vld [vmem:[%s945_s27 + $0x448] sm:$0xff]  ;;  %v279_v42 = vld [vmem:[%s945_s27 + $0x338] sm:$0xff] }
  0x58   : > { %510 = vmatpush.msrb.mxu2 %v177_v54  ;;  %725 = vmatmul.msk.f32.vlgmr.msrb.gmra.mxu1 %vm365_vm1, %v1094_v2  ;;  %v281_v39 = vld [vmem:[%s945_s27 + $0x348] sm:$0xff]  ;;  %v243_v43 = vld [vmem:[%s945_s27 + $0x218] sm:$0xff] }
  0x59   : > { %470 = vmatpush.msrb.mxu0 %v304_v55  ;;  %525 = vmatpush.msrb.mxu3 %v219_v3  ;;  %v245_v40 = vld [vmem:[%s945_s27 + $0x228] sm:$0xff]  ;;  %v339_v47 = vld [vmem:[%s945_s27 + $0x518] sm:$0xff] }
  0x5a   : > { %575 = vmatpush.msra.mxu2 %v335_v56  ;;  %471 = vmatmul.f32.vlgmr.msrb.gmra.mxu0 %v1084_v58  ;;  %v309_v44 = vld [vmem:[%s945_s27 + $0x428] sm:$0xff]  ;;  %v307_v48 = vld [vmem:[%s945_s27 + $0x418] sm:$0xff] }
  0x5b   : > { %555 = vmatpush.msra.mxu0 %v303_v57  ;;  %540 = vmatpush.msra.mxu1 %v261_v6  ;;  %v277_v45 = vld [vmem:[%s945_s27 + $0x328] sm:$0xff]  ;;  %v275_v49 = vld [vmem:[%s945_s27 + $0x318] sm:$0xff] }
  0x5c   : > { %576 = vmatpush.msra.mxu2 %v333_v60  ;;  %526 = vmatpush.msrb.mxu3 %v217_v7  ;;  %v241_v46 = vld [vmem:[%s945_s27 + $0x208] sm:$0xff] }
  0x5d   : > { %556 = vmatpush.msra.mxu0 %v301_v61  ;;  %541 = vmatpush.msra.mxu1 %v259_v10  ;;  %v337_v50 = vld [vmem:[%s945_s27 + $0x508] sm:$0xff] }
  0x5e   : > { %577 = vmatpush.msra.mxu2 %v331_v0  ;;  %527 = vmatpush.msrb.mxu3 %v215_v11  ;;  %v305_v51 = vld [vmem:[%s945_s27 + $0x408] sm:$0xff] }
  0x5f   : > { %557 = vmatpush.msra.mxu0 %v299_v1  ;;  %542 = vmatpush.msra.mxu1 %v257_v14  ;;  %v273_v52 = vld [vmem:[%s945_s27 + $0x308] sm:$0xff] }
  0x60   : > { %578 = vmatpush.msra.mxu2 %v329_v4  ;;  %528 = vmatpush.msrb.mxu3 %v213_v15 }
  0x61   : > { %558 = vmatpush.msra.mxu0 %v297_v5  ;;  %543 = vmatpush.msra.mxu1 %v255_v18 }
  0x62   : > { %579 = vmatpush.msra.mxu2 %v327_v8  ;;  %529 = vmatpush.msrb.mxu3 %v211_v19 }
  0x63   : > { %559 = vmatpush.msra.mxu0 %v295_v9  ;;  %544 = vmatpush.msra.mxu1 %v253_v22 }
  0x64   : > { %580 = vmatpush.msra.mxu2 %v325_v12  ;;  %530 = vmatpush.msrb.mxu3 %v209_v23 }
  0x65   : > { %560 = vmatpush.msra.mxu0 %v293_v13  ;;  %545 = vmatpush.msra.mxu1 %v251_v26 }
  0x66   : > { %581 = vmatpush.msra.mxu2 %v323_v16  ;;  %531 = vmatmul.f32.vlgmr.msrb.gmra.mxu3 %v1057_v36  ;;  %v341_v36 = vld [vmem:[%s945_s27 + $0x528] sm:$0xff] }
  0x67   : > { %561 = vmatpush.msra.mxu0 %v291_v17  ;;  %511 = vmatmul.f32.vlgmr.msrb.gmra.mxu2 %v1052_v33  ;;  %v311_v33 = vld [vmem:[%s945_s27 + $0x438] sm:$0xff] }
  0x68   : > { %582 = vmatpush.msra.mxu2 %v321_v20  ;;  %546 = vmatpush.msra.mxu1 %v249_v30 }
  0x69   : > { %562 = vmatpush.msra.mxu0 %v289_v21  ;;  %726 = vmatpush.msk.msra.mxu3 %vm368_vm0, %v345_v35 }
  0x6a   : > { %583 = vmatpush.msra.mxu2 %v319_v24  ;;  %547 = vmatpush.msra.mxu1 %v247_v34 }
  0x6b   : > { %563 = vmatpush.msra.mxu0 %v287_v25  ;;  %607 = vmatpush.msra.mxu3 %v343_v41 }
  0x6c   : > { %584 = vmatpush.msra.mxu2 %v317_v27  ;;  %548 = vmatpush.msra.mxu1 %v245_v40 }
  0x6d   : > { %564 = vmatpush.msra.mxu0 %v285_v29  ;;  %608 = vmatpush.msra.mxu3 %v341_v36 }
  0x6e   : > { %585 = vmatpush.msra.mxu2 %v315_v31  ;;  %549 = vmatpush.msra.mxu1 %v243_v43 }
  0x6f   : > { %565 = vmatpush.msra.mxu0 %v283_v32  ;;  %609 = vmatpush.msra.mxu3 %v339_v47 }
  0x70   : > { %586 = vmatpush.msra.mxu2 %v313_v38  ;;  %550 = vmatpush.msra.mxu1 %v241_v46 }
  0x71   : > { %566 = vmatpush.msra.mxu0 %v281_v39  ;;  %551 = vmatmul.f32.vlgmr.msra.gmra.mxu1 %v1046_v28 }
  0x72   : > { %587 = vmatpush.msra.mxu2 %v311_v33  ;;  %610 = vmatpush.msra.mxu3 %v337_v50 }
  0x73   : > { %567 = vmatpush.msra.mxu0 %v279_v42  ;;  %727 = vmatmul.msk.f32.vlgmr.msra.gmra.mxu3 %vm365_vm1, %v1094_v2 }
  0x74   : > { %588 = vmatpush.msra.mxu2 %v309_v44 }
  0x75   : > { %568 = vmatpush.msra.mxu0 %v277_v45 }
  0x76   : > { %589 = vmatpush.msra.mxu2 %v307_v48 }
  0x77   : > { %569 = vmatpush.msra.mxu0 %v275_v49 }
  0x78   : > { %590 = vmatpush.msra.mxu2 %v305_v51 }
  0x79   : > { %570 = vmatpush.msra.mxu0 %v273_v52  ;;  %591 = vmatmul.f32.vlgmr.msra.gmra.mxu2 %v1084_v58 }
  0x7a   : > { %571 = vmatmul.f32.vlgmr.msra.gmra.mxu0 %v1059_v37 }
  0xc7   : > { %v392_v54 = vpop.f32.mrf.mxu0 }
  0xc8   : > { %v412_v53 = vpop.f32.mrf.mxu1 }
  0xc9   : > { %v413_v61 = vadd.f32 %v412_v53, %v392_v54 }
  0xca   : > { %v432_v55 = vpop.f32.mrf.mxu2 }
  0xcb   : > { %v433_v0 = vadd.f32 %v432_v55, %v413_v61 }
  0xcf   : > { %v452_v56 = vpop.f32.mrf.mxu3 }
  0xd0   : > { %v453_v37 = vadd.f32 %v452_v56, %v433_v0 }
  0xd5   : > { %v492_v57 = vpop.f32.mrf.mxu1 }
  0xd7   : > { %v472_v59 = vpop.f32.mrf.mxu0 }
  0xd8   : > { %v473_v4 = vadd.f32 %v472_v59, %v453_v37 }
  0xda   : > { %v493_v8 = vadd.f32 %v492_v57, %v473_v4 }
  0xe9   : > { %v532_v28 = vpop.f32.mrf.mxu3 }
  0xea   : > { %v512_v60 = vpop.f32.mrf.mxu2 }
  0xeb   : > { %v533_v62 = vadd.f32 %v532_v28, %v512_v60 }
  0xee   : > { %v552_v63 = vpop.f32.mrf.mxu1 }
  0xef   : > { %v553_v58 = vadd.f32 %v552_v63, %v533_v62 }
  0xf6   : > { %v612_v6 = vpop.f32.mrf.mxu3 }
  0xf7   : > { %v572_v1 = vpop.f32.mrf.mxu0 }
  0xf8   : > { %v573_v2 = vadd.f32 %v572_v1, %v553_v58 }
  0xfc   : > { %v592_v3 = vpop.f32.mrf.mxu2 }
  0xfd   : > { %v593_v5 = vadd.f32 %v592_v3, %v573_v2 }
  0xff   : > { %v613_v7 = vadd.f32 %v612_v6, %v593_v5 }
 0x101   : > { %v617_v9 = vrot.slane %v613_v7, 4 }
 0x103   : > { %v619_v10 = vsel %vm618_vm2, %v493_v8, %v617_v9 }
 0x104   : > { %621 = vst [vmem:[%s161_s20] sm:$0xff] %v619_v10 }
 0x105   : > { %817 = shalt.err (!%p814_p5)
}
 0x106   : > { %735 = dma.vmem_to_hbm [thread:$0]  (%p925_p4), %s639_s23, 128, %s641_s24, %s623_s12  }
 0x107 PF: > { %p741_p6 = scmp.ge.s32.totalorder %s868_s14, 2  ;;  %s652_s4 = sand.u32 1, %s848_s9  }
 0x108   : > { %s653_s5 = scalar_lea.sflag [#allocation3], %s652_s4 }
 0x109   : > { %p738_p7 = pnand %p741_p6, %p932_p8 }
 0x10b   : > { %p739_p9 = pneg %p738_p7 }
 0x10d   : > { %843 = dma.done.wait (%p739_p9), %s653_s5, 128  }
 0x10e   : > { %845 = vsyncadd (%p739_p9), %s653_s5, 4294967168  ;;  %s15_s14 = sadd.s32 1, %s868_s14   ;;  %s1196_s9 = smov %s852_s10 }
 0x10f   : > { %p12_p10 = scmp.ge.s32.totalorder %s15_s14, 4   ;;  %s1197_s10 = smov %s856_s11 }
 0x110   : > { %s1198_s11 = smov %s938_s22  ;;  %s1199_s12 = smov %s864_s13 }
 0x111   : > { %s1200_s13 = smov %s1202_s17  ;;  %14 = sbr.rel (!%p12_p10) target bundleno = 4 (0x4), region = 65 }
 0x116   :  { %659 = vsyncpa [#allocation3], 1 }
 0x117   :  { %661 = vsyncpa [#allocation3 + $0x1], 1 }

</bundles_post_ra>
